<compile_context>
chip_gen: v7x
topology: tpu7x:2x2x1
jax: 0.10.0
libtpu: 0.0.40
codegen_flags: <defaults>
</compile_context>

<pallas_src>
import jax
import jax.numpy as jnp
from jax.experimental import pallas as pl
from jax.experimental.pallas import tpu as pltpu


def _encoder1_conv_kernel(x_ref, w_ref, b_ref, o_ref, slab_ref):
    # x_ref   : (N, H, W*Cin)       lane-dense input rows (ci fastest in lanes)
    # w_ref   : (3*W*Cin, W*Cout)   block-banded weight (kw zero-pad folded in)
    # b_ref   : (1, W*Cout)         bias tiled over W
    # o_ref   : (N*H, W*Cout)       lane-dense output rows
    # slab_ref: (N, H, 3*W*Cin)     im2col slab (only vertical halo rows zeroed)
    N, H, WCin = x_ref.shape
    NH, WCout = o_ref.shape
    K = 3 * WCin

    x = x_ref[...]
    zrow = jnp.zeros((N, 1, WCin), dtype=x.dtype)

    # Block kh=0: input row h-1 (zero halo at h == 0).
    slab_ref[:, 0:1, 0:WCin] = zrow
    slab_ref[:, 1:H, 0:WCin] = x[:, 0:H - 1, :]
    # Block kh=1: input row h (full aligned copy, no halo).
    slab_ref[:, :, WCin:2 * WCin] = x
    # Block kh=2: input row h+1 (zero halo at h == H-1).
    slab_ref[:, 0:H - 1, 2 * WCin:K] = x[:, 1:H, :]
    slab_ref[:, H - 1:H, 2 * WCin:K] = zrow

    # Single MXU pass folds kh, kw and the Cin->Cout mix; bias + ReLU epilogue,
    # one dense 128-lane store.
    acc = jnp.dot(slab_ref[...].reshape(NH, K), w_ref[...],
                  preferred_element_type=jnp.float32)
    acc = acc + b_ref[...].astype(jnp.float32)
    o_ref[...] = jnp.maximum(acc, 0.0).astype(o_ref.dtype)


def prepare_encoder1_params(weight_oihw, bias, W):
    """Build the block-banded weight and tiled bias ONCE (weights are static).

    bigw[kh*W*Cin + wi*Cin + ci, wo*Cout + co] =
        weight[co, ci, kh, wi - wo + 1]   if 0 <= wi - wo + 1 <= 2 else 0
    Out-of-image kw taps are simply absent -> horizontal zero padding for free.
    """
    w_hwio = jnp.transpose(weight_oihw, (2, 3, 1, 0))         # (3, 3, Cin, Cout)
    Cout = weight_oihw.shape[0]
    blocks = []
    for kh in range(3):
        blk = sum(jnp.kron(jnp.eye(W, dtype=w_hwio.dtype, k=1 - kw),
                           w_hwio[kh, kw]) for kw in range(3))  # (W*Cin, W*Cout)
        blocks.append(blk)
    bigw = jnp.concatenate(blocks, axis=0)                      # (3*W*Cin, W*Cout)
    b_tiled = jnp.tile(bias, W).reshape(1, W * Cout)            # (1, W*Cout)
    return bigw, b_tiled


def encoder1_conv_rows(x_rows, bigw, b_tiled, *, cin):
    """Lane-dense forward: (N, H, W*Cin) -> (N*H, W*Cout). Use this across
    layers to keep activations lane-dense and avoid per-layer transposes."""
    N, H, WCin = x_rows.shape
    W = WCin // cin
    WCout = b_tiled.shape[-1]
    Cout = WCout // W

    flops = 2 * N * H * W * Cout * 9 * cin
    bytes_accessed = 4 * (x_rows.size + bigw.size + b_tiled.size + N * H * WCout)

    return pl.pallas_call(
        _encoder1_conv_kernel,
        out_shape=jax.ShapeDtypeStruct((N * H, WCout), x_rows.dtype),
        grid=(1,),
        in_specs=[
            pl.BlockSpec((N, H, WCin), lambda i: (0, 0, 0)),
            pl.BlockSpec((3 * WCin, WCout), lambda i: (0, 0)),
            pl.BlockSpec((1, WCout), lambda i: (0, 0)),
        ],
        out_specs=pl.BlockSpec((N * H, WCout), lambda i: (0, 0)),
        scratch_shapes=[pltpu.VMEM((N, H, 3 * WCin), x_rows.dtype)],
        compiler_params=pltpu.CompilerParams(
            dimension_semantics=("arbitrary",)),
        cost_estimate=pl.CostEstimate(flops=flops, transcendentals=0,
                                      bytes_accessed=bytes_accessed),
    )(x_rows, bigw, b_tiled)


def encoder1_conv(x_nchw, weight_oihw, bias, *, params=None):
    """Forward pass of Encoder1Conv: Conv2d(in_ch, out_ch, 3, padding=1) + ReLU.

    x_nchw:      (N, Cin, H, W)    float32, PyTorch layout
    weight_oihw: (Cout, Cin, 3, 3) float32, PyTorch layout
    bias:        (Cout,)           float32
    params:      optional precomputed (bigw, b_tiled) from prepare_encoder1_params
    returns:     (N, Cout, H, W)   float32, PyTorch layout
    """
    N, Cin, H, W = x_nchw.shape
    Cout = weight_oihw.shape[0]
    if params is None:
        params = prepare_encoder1_params(weight_oihw, bias, W)
    bigw, b_tiled = params

    # Layout glue required only at the PyTorch (NCHW) module boundary.
    x_rows = jnp.transpose(x_nchw, (0, 2, 3, 1)).reshape(N, H, W * Cin)
    out_rows = encoder1_conv_rows(x_rows, bigw, b_tiled, cin=Cin)
    return jnp.transpose(out_rows.reshape(N, H, W, Cout), (0, 3, 1, 2))


def _reference(x_nchw, weight_oihw, bias):
    # Pure-JAX reference (NCHW conv) for a correctness check.
    out = jax.lax.conv_general_dilated(
        x_nchw, weight_oihw,
        window_strides=(1, 1),
        padding=((1, 1), (1, 1)),
        dimension_numbers=("NCHW", "OIHW", "NCHW"))
    out = out + bias.reshape(1, -1, 1, 1)
    return jnp.maximum(out, 0.0)


if __name__ == "__main__":
    # Small shapes consistent with the module: batch=2, in_ch=4, out_ch=8, 16x16 spatial.
    N, Cin, Cout, H, W = 2, 4, 8, 16, 16

    key = jax.random.PRNGKey(0)
    kx, kw_, kb = jax.random.split(key, 3)
    x = jax.random.normal(kx, (N, Cin, H, W), dtype=jnp.float32)
    weight = jax.random.normal(kw_, (Cout, Cin, 3, 3), dtype=jnp.float32) * 0.1
    bias = jax.random.normal(kb, (Cout,), dtype=jnp.float32) * 0.1

    # Static-weight hoist: build the banded weight / tiled bias once, not per step.
    params = jax.block_until_ready(prepare_encoder1_params(weight, bias, W))

    fwd = jax.jit(lambda xin: encoder1_conv(xin, weight, bias, params=params))
    out = jax.block_until_ready(fwd(x))

    ref = jax.block_until_ready(_reference(x, weight, bias))
    assert out.shape == (N, Cout, H, W)
    assert jnp.max(jnp.abs(out - ref)) < 1e-4

    print("KERNEL_OK")
</pallas_src>

<mosaic_0001>
module attributes {stable_mosaic.version = 11 : i64} {
  func.func @_encoder1_conv_kernel(%arg0: i32, %arg1: memref<2x16x64xf32, #tpu.memory_space<vmem>>, %arg2: memref<192x128xf32, #tpu.memory_space<vmem>>, %arg3: memref<1x128xf32, #tpu.memory_space<vmem>>, %arg4: memref<32x128xf32, #tpu.memory_space<vmem>>, %arg5: memref<2x16x192xf32, #tpu.memory_space<vmem>>) attributes {dimension_semantics = [#tpu.dimension_semantics<arbitrary>], iteration_bounds = array<i64: 1>, scalar_prefetch = 0 : i64, scratch_operands = 1 : i64, tpu.core_type = #tpu.core_type<tc>, window_params = [{pipeline_mode = #tpu.pipeline_mode<synchronous>, transform_indices = @transform_0, window_bounds = array<i64: 2, 16, 64>}, {pipeline_mode = #tpu.pipeline_mode<synchronous>, transform_indices = @transform_1, window_bounds = array<i64: 192, 128>}, {pipeline_mode = #tpu.pipeline_mode<synchronous>, transform_indices = @transform_2, window_bounds = array<i64: 1, 128>}, {pipeline_mode = #tpu.pipeline_mode<synchronous>, transform_indices = @transform_3, window_bounds = array<i64: 32, 128>}]} {
    %c0 = arith.constant 0 : index
    %c0_0 = arith.constant 0 : index
    %c0_1 = arith.constant 0 : index
    %0 = vector.load %arg1[%c0, %c0_0, %c0_1] : memref<2x16x64xf32, #tpu.memory_space<vmem>>, vector<2x16x64xf32>
    %cst = arith.constant 0.000000e+00 : f32
    %1 = vector.broadcast %cst : f32 to vector<2x1x64xf32>
    %c0_2 = arith.constant 0 : index
    %c0_3 = arith.constant 0 : index
    %c0_4 = arith.constant 0 : index
    %2 = vector.load %arg5[%c0_2, %c0_3, %c0_4] : memref<2x16x192xf32, #tpu.memory_space<vmem>>, vector<2x1x64xf32>
    tpu.vector_store %arg5[%c0_2, %c0_3, %c0_4], %1 {strides = array<i32>} : memref<2x16x192xf32, #tpu.memory_space<vmem>>, vector<2x1x64xf32>,
    %3 = vector.extract_strided_slice %0 {offsets = [0, 0, 0], sizes = [2, 15, 64], strides = [1, 1, 1]} : vector<2x16x64xf32> to vector<2x15x64xf32>
    %c0_5 = arith.constant 0 : index
    %c1 = arith.constant 1 : index
    %c0_6 = arith.constant 0 : index
    %4 = vector.load %arg5[%c0_5, %c1, %c0_6] : memref<2x16x192xf32, #tpu.memory_space<vmem>>, vector<2x15x64xf32>
    tpu.vector_store %arg5[%c0_5, %c1, %c0_6], %3 {strides = array<i32>} : memref<2x16x192xf32, #tpu.memory_space<vmem>>, vector<2x15x64xf32>,
    %c0_7 = arith.constant 0 : index
    %c0_8 = arith.constant 0 : index
    %c64 = arith.constant 64 : index
    %5 = vector.load %arg5[%c0_7, %c0_8, %c64] : memref<2x16x192xf32, #tpu.memory_space<vmem>>, vector<2x16x64xf32>
    tpu.vector_store %arg5[%c0_7, %c0_8, %c64], %0 {strides = array<i32>} : memref<2x16x192xf32, #tpu.memory_space<vmem>>, vector<2x16x64xf32>,
    %6 = vector.extract_strided_slice %0 {offsets = [0, 1, 0], sizes = [2, 15, 64], strides = [1, 1, 1]} : vector<2x16x64xf32> to vector<2x15x64xf32>
    %c0_9 = arith.constant 0 : index
    %c0_10 = arith.constant 0 : index
    %c128 = arith.constant 128 : index
    %7 = vector.load %arg5[%c0_9, %c0_10, %c128] : memref<2x16x192xf32, #tpu.memory_space<vmem>>, vector<2x15x64xf32>
    tpu.vector_store %arg5[%c0_9, %c0_10, %c128], %6 {strides = array<i32>} : memref<2x16x192xf32, #tpu.memory_space<vmem>>, vector<2x15x64xf32>,
    %c0_11 = arith.constant 0 : index
    %c15 = arith.constant 15 : index
    %c128_12 = arith.constant 128 : index
    %8 = vector.load %arg5[%c0_11, %c15, %c128_12] : memref<2x16x192xf32, #tpu.memory_space<vmem>>, vector<2x1x64xf32>
    tpu.vector_store %arg5[%c0_11, %c15, %c128_12], %1 {strides = array<i32>} : memref<2x16x192xf32, #tpu.memory_space<vmem>>, vector<2x1x64xf32>,
    %c0_13 = arith.constant 0 : index
    %c0_14 = arith.constant 0 : index
    %c0_15 = arith.constant 0 : index
    %9 = vector.load %arg5[%c0_13, %c0_14, %c0_15] : memref<2x16x192xf32, #tpu.memory_space<vmem>>, vector<2x16x192xf32>
    %10 = vector.shape_cast %9 : vector<2x16x192xf32> to vector<32x192xf32>
    %c0_16 = arith.constant 0 : index
    %c0_17 = arith.constant 0 : index
    %11 = vector.load %arg2[%c0_16, %c0_17] : memref<192x128xf32, #tpu.memory_space<vmem>>, vector<192x128xf32>
    %cst_18 = arith.constant dense<0.000000e+00> : vector<32x128xf32>
    %12 = tpu.matmul %10, %11, %cst_18 {dimension_numbers = #tpu.dot_dimension_numbers<[1], [0], [0], [1], [0, 0, 1, 1], [], []>} : vector<32x192xf32>, vector<192x128xf32>, vector<32x128xf32> -> vector<32x128xf32>
    %c0_19 = arith.constant 0 : index
    %c0_20 = arith.constant 0 : index
    %13 = vector.load %arg3[%c0_19, %c0_20] : memref<1x128xf32, #tpu.memory_space<vmem>>, vector<1x128xf32>
    %14 = vector.broadcast %13 : vector<1x128xf32> to vector<32x128xf32>
    %15 = arith.addf %12, %14 : vector<32x128xf32>
    %cst_21 = arith.constant 0.000000e+00 : f32
    %16 = vector.broadcast %cst_21 : f32 to vector<32x128xf32>
    %17 = arith.maximumf %15, %16 : vector<32x128xf32>
    %c0_22 = arith.constant 0 : index
    %c0_23 = arith.constant 0 : index
    %18 = vector.load %arg4[%c0_22, %c0_23] : memref<32x128xf32, #tpu.memory_space<vmem>>, vector<32x128xf32>
    tpu.vector_store %arg4[%c0_22, %c0_23], %17 {strides = array<i32>} : memref<32x128xf32, #tpu.memory_space<vmem>>, vector<32x128xf32>,
    return
  }
  func.func @transform_0(%arg0: i32) -> (i32, i32, i32) {
    %c0_i32 = arith.constant 0 : i32
    %c0_i32_0 = arith.constant 0 : i32
    %c0_i32_1 = arith.constant 0 : i32
    %c0_i32_2 = arith.constant 0 : i32
    return %c0_i32, %c0_i32_0, %c0_i32_1 : i32, i32, i32
  }
  func.func @transform_1(%arg0: i32) -> (i32, i32) {
    %c0_i32 = arith.constant 0 : i32
    %c0_i32_0 = arith.constant 0 : i32
    %c0_i32_1 = arith.constant 0 : i32
    return %c0_i32, %c0_i32_0 : i32, i32
  }
  func.func @transform_2(%arg0: i32) -> (i32, i32) {
    %c0_i32 = arith.constant 0 : i32
    %c0_i32_0 = arith.constant 0 : i32
    %c0_i32_1 = arith.constant 0 : i32
    return %c0_i32, %c0_i32_0 : i32, i32
  }
  func.func @transform_3(%arg0: i32) -> (i32, i32) {
    %c0_i32 = arith.constant 0 : i32
    %c0_i32_0 = arith.constant 0 : i32
    %c0_i32_1 = arith.constant 0 : i32
    return %c0_i32, %c0_i32_0 : i32, i32
  }
}

</mosaic_0001>

<bundles_post_ra>
// kernel: _lambda_.1
= control target key start
LH: loop header
LB: loop body
LE: loop exit
PB: predicated region body
PF: predicated region fallthrough
CT: control target
= control target key end

     0   :  { %vm36_vm0 = vcmask 523265   ;;  %vm38_vm1 = vcmask 523264   ;;  %vm59_vm2 = vcmask 1046528   ;;  %vm71_vm3 = vcmask 522240   ;;  %s293_s18 = smov 64   ;;  %s457_s0 = inlined_call_operand.vmem [shape: f32[2,16,64], index: 0, kind: input, shape index: {}]   ;;  %s458_s1 = inlined_call_operand.vmem [shape: f32[192,128], index: 1, kind: input, shape index: {}]   ;;  %s459_s2 = inlined_call_operand.vmem [shape: f32[1,128], index: 2, kind: input, shape index: {}]   ;;  %s460_s3 = inlined_call_operand.vmem [shape: f32[32,128], index: 3, kind: output, shape index: {}]  }
   0x1   :  { %v14_v0 = vld [vmem:[%s457_s0] sm:$0xff]  ;;  %v15_v1 = vld [vmem:[%s457_s0 + $0x8] sm:$0xff]  ;;  %v16_v2 = vld [vmem:[%s457_s0 + $0x10] sm:$0xff]  ;;  %vm18_vm4 = vcmask 516096   ;;  %v294_v9 = vmov 0.0   ;;  %v295_v14 = vmov 0.0|0.0  }
   0x2   :  { %42 = vrot.lane.b32.xlu0 %v14_v0, %s293_s18  ;;  %v26_v3 = vrot.slane %v14_v0, 7  ;;  %v60_v4 = vrot.slane %v14_v0, 1  ;;  %44 = vrot.lane.b32.xlu1 %v15_v1, %s293_s18  ;;  %v27_v5 = vrot.slane %v15_v1, 7  ;;  %v61_v6 = vrot.slane %v15_v1, 1  ;;  %v17_v7 = vld [vmem:[%s457_s0 + $0x18] sm:$0xff]  ;;  %v85_v8 = vld [vmem:[%s458_s1] sm:$0xff] }
   0x3   :  { %19 = vst.msk [vmem:[#allocation2] sm:$0x1] %vm18_vm4, %v294_v9  ;;  %75 = vst.msk [vmem:[#allocation2 + $0x1f] sm:$0x1] %vm18_vm4, %v294_v9  ;;  %v29_v10 = vrot.slane %v16_v2, 7  ;;  %v63_v11 = vrot.slane %v16_v2, 1  ;;  %230 = vmatprep.subr.bf16.mxu0 %v295_v14  ;;  %266 = vmatprep.subr.bf16.mxu1 %v295_v14 }
   0x4   :  { %76 = vst.msk [vmem:[#allocation2 + $0x3f] sm:$0x1] %vm18_vm4, %v294_v9  ;;  %20 = vst.msk [vmem:[#allocation2 + $0x20] sm:$0x1] %vm18_vm4, %v294_v9  ;;  %v30_v12 = vrot.slane %v17_v7, 7  ;;  %v64_v13 = vrot.slane %v17_v7, 1  ;;  %v62_v16 = vsel %vm59_vm2, %v60_v4, %v61_v6 }
   0x5   :  { %v86_v15 = vld [vmem:[%s458_s1 + $0x8] sm:$0xff]  ;;  %37 = vst.msk [vmem:[#allocation2] sm:$0xfe] %vm36_vm0, %v26_v3  ;;  %v87_v18 = vld [vmem:[%s458_s1 + $0x10] sm:$0xff]  ;;  %v88_v19 = vld [vmem:[%s458_s1 + $0x18] sm:$0xff]  ;;  %vm25_vm5 = vcmask 1040384  }
   0x6   :  { %72 = vst.msk [vmem:[#allocation2 + $0x18] sm:$0x7f] %vm71_vm3, %v61_v6  ;;  %v231_v17 = vpack.c.bf16 %v86_v15, %v85_v8  ;;  %v65_v20 = vsel %vm59_vm2, %v63_v11, %v64_v13  ;;  %74 = vst.msk [vmem:[#allocation2 + $0x38] sm:$0x7f] %vm71_vm3, %v64_v13  ;;  %v28_v21 = vsel %vm25_vm5, %v26_v3, %v27_v5  ;;  %46 = vrot.lane.b32.xlu0 %v16_v2, %s293_s18  ;;  %v89_v24 = vld [vmem:[%s458_s1 + $0x20] sm:$0xff]  ;;  %v90_v25 = vld [vmem:[%s458_s1 + $0x28] sm:$0xff] }
   0x7   :  { %70 = vst.msk [vmem:[#allocation2 + $0x8] sm:$0xff] %vm38_vm1, %v62_v16  ;;  %73 = vst.msk [vmem:[#allocation2 + $0x28] sm:$0xff] %vm38_vm1, %v65_v20  ;;  %48 = vrot.lane.b32.xlu1 %v17_v7, %s293_s18  ;;  %v31_v22 = vsel %vm25_vm5, %v29_v10, %v30_v12  ;;  %v234_v23 = vpack.c.bf16 %v88_v19, %v87_v18  ;;  %v237_v26 = vpack.c.bf16 %v90_v25, %v89_v24  ;;  %v91_v27 = vld [vmem:[%s458_s1 + $0x30] sm:$0xff]  ;;  %v92_v28 = vld [vmem:[%s458_s1 + $0x38] sm:$0xff]  ;;  %vm54_vm6 = vcmask 1048064  }
   0x8   :  { %40 = vst.msk [vmem:[#allocation2 + $0x20] sm:$0xfe] %vm36_vm0, %v29_v10  ;;  %232 = vmatpush1.bf16.msra.mxu0 %v231_v17  ;;  %278 = vmatpush1.bf16.msra.mxu1 %v231_v17  ;;  %v240_v31 = vpack.c.bf16 %v92_v28, %v91_v27  ;;  %v93_v32 = vld [vmem:[%s458_s1 + $0x40] sm:$0xff]  ;;  %v94_v33 = vld [vmem:[%s458_s1 + $0x48] sm:$0xff]  ;;  %v95_v35 = vld [vmem:[%s458_s1 + $0x50] sm:$0xff] }
   0x9   :  { %39 = vst.msk [vmem:[#allocation2 + $0x10] sm:$0xff] %vm38_vm1, %v28_v21  ;;  %41 = vst.msk [vmem:[#allocation2 + $0x30] sm:$0xff] %vm38_vm1, %v31_v22  ;;  %233 = vmatprep.subr.bf16.mxu0 %v295_v14  ;;  %267 = vmatprep.subr.bf16.mxu1 %v295_v14  ;;  %v243_v34 = vpack.c.bf16 %v94_v33, %v93_v32  ;;  %v96_v36 = vld [vmem:[%s458_s1 + $0x58] sm:$0xff]  ;;  %v97_v38 = vld [vmem:[%s458_s1 + $0x60] sm:$0xff] }
   0xa   :  { %v246_v37 = vpack.c.bf16 %v96_v36, %v95_v35  ;;  %v98_v39 = vld [vmem:[%s458_s1 + $0x68] sm:$0xff]  ;;  %v99_v41 = vld [vmem:[%s458_s1 + $0x70] sm:$0xff]  ;;  %v100_v42 = vld [vmem:[%s458_s1 + $0x78] sm:$0xff] }
   0xb   :  { %v249_v40 = vpack.c.bf16 %v98_v39, %v97_v38  ;;  %v252_v43 = vpack.c.bf16 %v100_v42, %v99_v41  ;;  %v101_v44 = vld [vmem:[%s458_s1 + $0x80] sm:$0xff]  ;;  %v102_v45 = vld [vmem:[%s458_s1 + $0x88] sm:$0xff]  ;;  %v103_v47 = vld [vmem:[%s458_s1 + $0x90] sm:$0xff] }
   0xc   :  { %235 = vmatpush1.bf16.msra.mxu0 %v234_v23  ;;  %279 = vmatpush1.bf16.msra.mxu1 %v234_v23  ;;  %v255_v46 = vpack.c.bf16 %v102_v45, %v101_v44  ;;  %v104_v48 = vld [vmem:[%s458_s1 + $0x98] sm:$0xff]  ;;  %v105_v50 = vld [vmem:[%s458_s1 + $0xa0] sm:$0xff]  ;;  %v106_v51 = vld [vmem:[%s458_s1 + $0xa8] sm:$0xff] }
   0xd   :  { %236 = vmatprep.subr.bf16.mxu0 %v295_v14  ;;  %268 = vmatprep.subr.bf16.mxu1 %v295_v14  ;;  %v258_v49 = vpack.c.bf16 %v104_v48, %v103_v47  ;;  %v261_v52 = vpack.c.bf16 %v106_v51, %v105_v50  ;;  %v107_v53 = vld [vmem:[%s458_s1 + $0xb0] sm:$0xff]  ;;  %v108_v54 = vld [vmem:[%s458_s1 + $0xb8] sm:$0xff]  ;;  %v225_v2 = vld [vmem:[%s459_s2] ss:$0 sm:$0xff] }
   0xe   :  { %v78_v29 = vld [vmem:[#allocation2 + $0x8] sm:$0xff]  ;;  %v264_v55 = vpack.c.bf16 %v108_v54, %v107_v53  ;;  %v80_v60 = vld [vmem:[#allocation2 + $0x18] sm:$0xff] }
   0xf   :  { %226 = vmatprep.mubr.msk.f32.mxu0 %vm38_vm1, %v78_v29  ;;  %v82_v30 = vld [vmem:[#allocation2 + $0x28] sm:$0xff]  ;;  %v84_v63 = vld [vmem:[#allocation2 + $0x38] sm:$0xff] }
  0x10   :  { %228 = vmatprep.mubr.msk.f32.mxu1 %vm38_vm1, %v82_v30  ;;  %238 = vmatpush1.bf16.msra.mxu0 %v237_v26 }
  0x11   :  { %280 = vmatpush1.bf16.msra.mxu1 %v237_v26  ;;  %239 = vmatprep.subr.bf16.mxu0 %v295_v14 }
  0x12   :  { %269 = vmatprep.subr.bf16.mxu1 %v295_v14 }
  0x14   :  { %241 = vmatpush1.bf16.msra.mxu0 %v240_v31 }
  0x15   :  { %281 = vmatpush1.bf16.msra.mxu1 %v240_v31  ;;  %242 = vmatprep.subr.bf16.mxu0 %v295_v14 }
  0x16   :  { %270 = vmatprep.subr.bf16.mxu1 %v295_v14 }
  0x18   :  { %244 = vmatpush1.bf16.msra.mxu0 %v243_v34 }
  0x19   :  { %282 = vmatpush1.bf16.msra.mxu1 %v243_v34  ;;  %245 = vmatprep.subr.bf16.mxu0 %v295_v14 }
  0x1a   :  { %271 = vmatprep.subr.bf16.mxu1 %v295_v14 }
  0x1c   :  { %247 = vmatpush1.bf16.msra.mxu0 %v246_v37 }
  0x1d   :  { %283 = vmatpush1.bf16.msra.mxu1 %v246_v37  ;;  %248 = vmatprep.subr.bf16.mxu0 %v295_v14 }
  0x1e   :  { %272 = vmatprep.subr.bf16.mxu1 %v295_v14 }
  0x20   :  { %250 = vmatpush1.bf16.msra.mxu0 %v249_v40 }
  0x21   :  { %284 = vmatpush1.bf16.msra.mxu1 %v249_v40  ;;  %251 = vmatprep.subr.bf16.mxu0 %v295_v14 }
  0x22   :  { %273 = vmatprep.subr.bf16.mxu1 %v295_v14 }
  0x24   :  { %253 = vmatpush1.bf16.msra.mxu0 %v252_v43 }
  0x25   :  { %285 = vmatpush1.bf16.msra.mxu1 %v252_v43  ;;  %254 = vmatprep.subr.bf16.mxu0 %v295_v14 }
  0x26   :  { %274 = vmatprep.subr.bf16.mxu1 %v295_v14 }
  0x28   :  { %256 = vmatpush1.bf16.msra.mxu0 %v255_v46 }
  0x29   :  { %286 = vmatpush1.bf16.msra.mxu1 %v255_v46  ;;  %257 = vmatprep.subr.bf16.mxu0 %v295_v14 }
  0x2a   :  { %275 = vmatprep.subr.bf16.mxu1 %v295_v14 }
  0x2c   :  { %259 = vmatpush1.bf16.msra.mxu0 %v258_v49 }
  0x2d   :  { %287 = vmatpush1.bf16.msra.mxu1 %v258_v49  ;;  %260 = vmatprep.subr.bf16.mxu0 %v295_v14 }
  0x2e   :  { %276 = vmatprep.subr.bf16.mxu1 %v295_v14 }
  0x30   :  { %262 = vmatpush1.bf16.msra.mxu0 %v261_v52 }
  0x31   :  { %288 = vmatpush1.bf16.msra.mxu1 %v261_v52  ;;  %263 = vmatprep.subr.bf16.mxu0 %v295_v14 }
  0x32   :  { %277 = vmatprep.subr.bf16.mxu1 %v295_v14 }
  0x34   :  { %265 = vmatpush1.bf16.msra.mxu0 %v264_v55 }
  0x35   :  { %289 = vmatpush1.bf16.msra.mxu1 %v264_v55 }
  0x74   :  { %v43_v56 = vpop.permute.xlu0 %42  ;;  %v45_v57 = vpop.permute.xlu1 %44 }
  0x75   :  { %55 = vst.msk [vmem:[#allocation2] sm:$0xff] %vm54_vm6, %v43_v56  ;;  %56 = vst.msk [vmem:[#allocation2 + $0x10] sm:$0xff] %vm54_vm6, %v45_v57 }
  0x78   :  { %v47_v58 = vpop.permute.xlu0 %46 }
  0x79   :  { %v49_v59 = vpop.permute.xlu1 %48  ;;  %57 = vst.msk [vmem:[#allocation2 + $0x20] sm:$0xff] %vm54_vm6, %v47_v58 }
  0x7a   :  { %58 = vst.msk [vmem:[#allocation2 + $0x30] sm:$0xff] %vm54_vm6, %v49_v59 }
  0x7c   :  { %v77_v61 = vld [vmem:[#allocation2] sm:$0xff]  ;;  %v79_v62 = vld [vmem:[#allocation2 + $0x10] sm:$0xff] }
  0x7d   :  { %193 = vmatmul.mubr.f32.vlgmr.msra.gmra.mrb[0].mxu0 %v77_v61 }
  0x7e   :  { %227 = vmatprep.mubr.msk.f32.mxu0 %vm38_vm1, %v80_v60 }
  0x80   :  { %v81_v0 = vld [vmem:[#allocation2 + $0x20] sm:$0xff] }
  0x81   :  { %198 = vmatmul.mubr.f32.gmra.mrb[2].mxu0 %v79_v62  ;;  %203 = vmatmul.mubr.f32.vlgmr.msra.gmra.mrb[0].mxu1 %v81_v0  ;;  %v83_v1 = vld [vmem:[#allocation2 + $0x30] sm:$0xff] }
  0x82   :  { %229 = vmatprep.mubr.msk.f32.mxu1 %vm38_vm1, %v84_v63 }
  0x85   :  { %208 = vmatmul.mubr.f32.gmra.mrb[2].mxu1 %v83_v1 }
 0x150   :  { %v194_v3 = vpop.f32.mrb[0].mxu0 }
 0x151   :  { %v195_v4 = vadd.f32 %v225_v2, %v194_v3  ;;  %v196_v5 = vpop.f32.mrb[1].mxu0 }
 0x153   :  { %v213_v6 = vmax.f32 %v195_v4, 0.0 }
 0x154   :  { %v199_v7 = vpop.f32.mrb[2].mxu0  ;;  %v204_v8 = vpop.f32.mrb[0].mxu1 }
 0x155   :  { %217 = vst [vmem:[%s460_s3] sm:$0xff] %v213_v6  ;;  %v200_v9 = vadd.f32 %v225_v2, %v199_v7  ;;  %v205_v10 = vadd.f32 %v225_v2, %v204_v8  ;;  %v201_v11 = vpop.f32.mrb[3].mxu0  ;;  %v206_v12 = vpop.f32.mrb[1].mxu1 }
 0x157   :  { %v214_v13 = vmax.f32 %v200_v9, 0.0  ;;  %v215_v14 = vmax.f32 %v205_v10, 0.0 }
 0x158   :  { %v209_v15 = vpop.f32.mrb[2].mxu1 }
 0x159   :  { %218 = vst [vmem:[%s460_s3 + $0x8] sm:$0xff] %v214_v13  ;;  %219 = vst [vmem:[%s460_s3 + $0x10] sm:$0xff] %v215_v14  ;;  %v210_v16 = vadd.f32 %v225_v2, %v209_v15  ;;  %v211_v17 = vpop.f32.mrb[3].mxu1 }
 0x15b   :  { %v216_v18 = vmax.f32 %v210_v16, 0.0 }
 0x15d   :  { %220 = vst [vmem:[%s460_s3 + $0x18] sm:$0xff] %v216_v18 }

</bundles_post_ra>
